<compile_context>
chip_gen: v7x
topology: tpu7x:2x2x1
jax: 0.10.0
libtpu: 0.0.40
codegen_flags: <defaults>
</compile_context>

<pallas_src>
import numpy as np
import jax
import jax.numpy as jnp
from jax import lax
from jax.experimental import pallas as pl
from jax.experimental.pallas import tpu as pltpu


# --------------------------------------------------------------------------
# Fused residual-block-chain Pallas kernel
# --------------------------------------------------------------------------
def _make_chain_kernel(L, block_cfgs):
    """block_cfgs: tuple of (Cin, Cout, project) for every fused block."""

    def conv3_bn(a_f32, w_ref, s_ref):
        # a_f32: [L, C] f32 activation.  w_ref: [3*C, Cout] bf16 (BN scale folded).
        C = a_f32.shape[1]
        zr = jnp.zeros((1, C), jnp.float32)
        ap = jnp.concatenate([zr, a_f32, zr], axis=0)                    # [L+2, C]
        a3 = jnp.concatenate([ap[0:L], ap[1:L + 1], ap[2:L + 2]], axis=1)  # [L, 3C]
        y = jnp.dot(a3.astype(jnp.bfloat16), w_ref[...],
                    preferred_element_type=jnp.float32)
        return y + s_ref[...]

    def kernel(x_ref, *refs):
        out_ref = refs[-1]
        a = x_ref[0]                         # [L, Cin0] f32: this grid step's batch elem
        idx = 0
        for (cin, cout, project) in block_cfgs:
            w1, s1, w2, s2 = refs[idx:idx + 4]
            idx += 4
            if project:
                wl, bl = refs[idx:idx + 2]
                idx += 2

            # conv1 + BN1 + ReLU   (single MXU push: [L,3*Cin] @ [3*Cin,Cout])
            h = jnp.maximum(conv3_bn(a, w1, s1), 0.0)
            # conv2 + BN2          (single MXU push: [L,3*Cout] @ [3*Cout,Cout])
            y = conv3_bn(h, w2, s2)

            # residual path
            if project:
                res = jnp.dot(a.astype(jnp.bfloat16), wl[...],
                              preferred_element_type=jnp.float32) + bl[...]
            else:
                res = a                       # identity residual, exact f32

            a = jnp.maximum(y + res, 0.0)     # stays in vregs for the next block

        out_ref[0] = a

    return kernel


def residual_chain_apply(params_list, x):
    """x: [B, Cin, L] (PyTorch NCL) -> [B, Cout_last, L].

    One fused pallas_call for the entire chain of residual blocks
    (inference-mode BN folded into per-channel scale/shift)."""
    B, cin0, L = x.shape
    eps = 1e-5

    # NCL -> [B, L, C] (channels on the lane axis).  No XLA-side padding: the
    # conv boundary is handled in-register inside the kernel.
    xt = jnp.transpose(x, (0, 2, 1)).astype(jnp.float32)
    args = [xt]
    in_specs = [pl.BlockSpec((1, L, cin0), lambda b: (b, 0, 0))]

    block_cfgs = []
    cin = cin0
    flops = 0
    for p in params_list:
        cout = p["w1"].shape[0]
        project = "wl" in p

        # Fold BN scale into conv weights (parameter prep, outside the kernel).
        s1 = p["g1"] / jnp.sqrt(p["rv1"] + eps)
        s2 = p["g2"] / jnp.sqrt(p["rv2"] + eps)
        shift1 = (p["be1"] + (p["b1"] - p["rm1"]) * s1)[None, :].astype(jnp.float32)
        shift2 = (p["be2"] + (p["b2"] - p["rm2"]) * s2)[None, :].astype(jnp.float32)
        # [Cout, Cin, 3] -> [3, Cin, Cout] -> [3*Cin, Cout]: one dot covers all 3 taps.
        w1 = jnp.transpose(p["w1"] * s1[:, None, None], (2, 1, 0)
                           ).reshape(3 * cin, cout).astype(jnp.bfloat16)
        w2 = jnp.transpose(p["w2"] * s2[:, None, None], (2, 1, 0)
                           ).reshape(3 * cout, cout).astype(jnp.bfloat16)

        args += [w1, shift1, w2, shift2]
        in_specs += [
            pl.BlockSpec((3 * cin, cout), lambda b: (0, 0)),
            pl.BlockSpec((1, cout), lambda b: (0, 0)),
            pl.BlockSpec((3 * cout, cout), lambda b: (0, 0)),
            pl.BlockSpec((1, cout), lambda b: (0, 0)),
        ]
        flops += 2 * L * cout * (3 * cin + 3 * cout)
        if project:
            args += [p["wl"].T.astype(jnp.bfloat16),
                     p["bl"][None, :].astype(jnp.float32)]
            in_specs += [pl.BlockSpec((cin, cout), lambda b: (0, 0)),
                         pl.BlockSpec((1, cout), lambda b: (0, 0))]
            flops += 2 * L * cin * cout
        block_cfgs.append((cin, cout, project))
        cin = cout

    cout_last = cin
    flops *= B
    bytes_accessed = int(sum(int(np.prod(a.shape)) * a.dtype.itemsize for a in args)
                         + B * L * cout_last * 4)

    kernel = _make_chain_kernel(L, tuple(block_cfgs))
    out = pl.pallas_call(
        kernel,
        out_shape=jax.ShapeDtypeStruct((B, L, cout_last), jnp.float32),
        grid=(B,),                            # one batch element per grid step
        in_specs=in_specs,
        out_specs=pl.BlockSpec((1, L, cout_last), lambda b: (b, 0, 0)),
        compiler_params=pltpu.CompilerParams(dimension_semantics=("parallel",)),
        cost_estimate=pl.CostEstimate(flops=int(flops), transcendentals=0,
                                      bytes_accessed=bytes_accessed),
    )(*args)

    # Layout plumbing back to the PyTorch NCL convention (once for the whole chain).
    return jnp.transpose(out, (0, 2, 1))


def residual_block_apply(p, x):
    """Single-block convenience wrapper."""
    return residual_chain_apply([p], x)


# --------------------------------------------------------------------------
# Deterministic parameter init (shapes match the PyTorch module, eval-mode BN)
# --------------------------------------------------------------------------
def init_resblock(key, cin, cout):
    ks = jax.random.split(key, 14)
    p = dict(
        w1=jax.random.normal(ks[0], (cout, cin, 3), jnp.float32) / np.sqrt(cin * 3),
        b1=0.05 * jax.random.normal(ks[1], (cout,), jnp.float32),
        g1=1.0 + 0.1 * jax.random.normal(ks[2], (cout,), jnp.float32),
        be1=0.05 * jax.random.normal(ks[3], (cout,), jnp.float32),
        rm1=0.05 * jax.random.normal(ks[4], (cout,), jnp.float32),
        rv1=1.0 + 0.5 * jax.random.uniform(ks[5], (cout,), jnp.float32),
        w2=jax.random.normal(ks[6], (cout, cout, 3), jnp.float32) / np.sqrt(cout * 3),
        b2=0.05 * jax.random.normal(ks[7], (cout,), jnp.float32),
        g2=1.0 + 0.1 * jax.random.normal(ks[8], (cout,), jnp.float32),
        be2=0.05 * jax.random.normal(ks[9], (cout,), jnp.float32),
        rm2=0.05 * jax.random.normal(ks[10], (cout,), jnp.float32),
        rv2=1.0 + 0.5 * jax.random.uniform(ks[11], (cout,), jnp.float32),
    )
    if cin != cout:
        p["wl"] = jax.random.normal(ks[12], (cout, cin), jnp.float32) / np.sqrt(cin)
        p["bl"] = 0.05 * jax.random.normal(ks[13], (cout,), jnp.float32)
    return p


# --------------------------------------------------------------------------
# Pure-JAX reference (mirrors the PyTorch forward, eval-mode BN)
# --------------------------------------------------------------------------
def _ref_bn(x, g, be, rm, rv, eps=1e-5):
    return ((x - rm[None, :, None]) * (g / jnp.sqrt(rv + eps))[None, :, None]
            + be[None, :, None])


def _ref_conv1d(x, w, b):
    y = lax.conv_general_dilated(x, w, (1,), ((1, 1),),
                                 dimension_numbers=("NCH", "OIH", "NCH"),
                                 precision=lax.Precision.HIGHEST)
    return y + b[None, :, None]


def ref_resblock(p, x):
    out = jax.nn.relu(_ref_bn(_ref_conv1d(x, p["w1"], p["b1"]),
                              p["g1"], p["be1"], p["rm1"], p["rv1"]))
    out = _ref_bn(_ref_conv1d(out, p["w2"], p["b2"]),
                  p["g2"], p["be2"], p["rm2"], p["rv2"])
    if "wl" in p:
        res = jnp.einsum("oc,bcl->bol", p["wl"], x,
                         precision=lax.Precision.HIGHEST) + p["bl"][None, :, None]
    else:
        res = x
    return jax.nn.relu(out + res)


# --------------------------------------------------------------------------
if __name__ == "__main__":
    B, L, CIN, CMID = 2, 16, 4, 32
    key = jax.random.PRNGKey(0)
    kx, k1, k2 = jax.random.split(key, 3)

    x = jax.random.normal(kx, (B, CIN, L), jnp.float32)
    p1 = init_resblock(k1, CIN, CMID)    # in_channels != out_channels -> Linear proj
    p2 = init_resblock(k2, CMID, CMID)   # identity residual path

    run = jax.jit(lambda p1, p2, x: residual_chain_apply([p1, p2], x))
    out = jax.block_until_ready(run(p1, p2, x))

    ref = ref_resblock(p2, ref_resblock(p1, x))
    err = float(jnp.max(jnp.abs(out - ref)))

    assert out.shape == (B, CMID, L), out.shape
    assert err < 5e-2, f"mismatch vs pure-JAX reference: max abs err = {err}"
    print("KERNEL_OK")
</pallas_src>

<mosaic_0001>
module attributes {stable_mosaic.version = 11 : i64} {
  func.func @kernel(%arg0: i32, %arg1: memref<1x16x4xf32, #tpu.memory_space<vmem>>, %arg2: memref<12x32xbf16, #tpu.memory_space<vmem>>, %arg3: memref<1x32xf32, #tpu.memory_space<vmem>>, %arg4: memref<96x32xbf16, #tpu.memory_space<vmem>>, %arg5: memref<1x32xf32, #tpu.memory_space<vmem>>, %arg6: memref<4x32xbf16, #tpu.memory_space<vmem>>, %arg7: memref<1x32xf32, #tpu.memory_space<vmem>>, %arg8: memref<96x32xbf16, #tpu.memory_space<vmem>>, %arg9: memref<1x32xf32, #tpu.memory_space<vmem>>, %arg10: memref<96x32xbf16, #tpu.memory_space<vmem>>, %arg11: memref<1x32xf32, #tpu.memory_space<vmem>>, %arg12: memref<1x16x32xf32, #tpu.memory_space<vmem>>) attributes {dimension_semantics = [#tpu.dimension_semantics<parallel>], iteration_bounds = array<i64: 2>, scalar_prefetch = 0 : i64, scratch_operands = 0 : i64, tpu.core_type = #tpu.core_type<tc>, window_params = [{transform_indices = @transform_0, window_bounds = array<i64: 1, 16, 4>}, {pipeline_mode = #tpu.pipeline_mode<synchronous>, transform_indices = @transform_1, window_bounds = array<i64: 12, 32>}, {pipeline_mode = #tpu.pipeline_mode<synchronous>, transform_indices = @transform_2, window_bounds = array<i64: 1, 32>}, {pipeline_mode = #tpu.pipeline_mode<synchronous>, transform_indices = @transform_3, window_bounds = array<i64: 96, 32>}, {pipeline_mode = #tpu.pipeline_mode<synchronous>, transform_indices = @transform_4, window_bounds = array<i64: 1, 32>}, {pipeline_mode = #tpu.pipeline_mode<synchronous>, transform_indices = @transform_5, window_bounds = array<i64: 4, 32>}, {pipeline_mode = #tpu.pipeline_mode<synchronous>, transform_indices = @transform_6, window_bounds = array<i64: 1, 32>}, {pipeline_mode = #tpu.pipeline_mode<synchronous>, transform_indices = @transform_7, window_bounds = array<i64: 96, 32>}, {pipeline_mode = #tpu.pipeline_mode<synchronous>, transform_indices = @transform_8, window_bounds = array<i64: 1, 32>}, {pipeline_mode = #tpu.pipeline_mode<synchronous>, transform_indices = @transform_9, window_bounds = array<i64: 96, 32>}, {pipeline_mode = #tpu.pipeline_mode<synchronous>, transform_indices = @transform_10, window_bounds = array<i64: 1, 32>}, {transform_indices = @transform_11, window_bounds = array<i64: 1, 16, 32>}]} {
    %c0 = arith.constant 0 : index
    %c0_0 = arith.constant 0 : index
    %c0_1 = arith.constant 0 : index
    %0 = vector.load %arg1[%c0, %c0_0, %c0_1] : memref<1x16x4xf32, #tpu.memory_space<vmem>>, vector<1x16x4xf32>
    %1 = vector.shape_cast %0 : vector<1x16x4xf32> to vector<16x4xf32>
    %cst = arith.constant 0.000000e+00 : f32
    %2 = vector.broadcast %cst : f32 to vector<1x4xf32>
    %3 = tpu.concatenate %2, %1, %2 in 0 : vector<1x4xf32>, vector<16x4xf32>, vector<1x4xf32> -> vector<18x4xf32>
    %4 = vector.extract_strided_slice %3 {offsets = [0, 0], sizes = [16, 4], strides = [1, 1]} : vector<18x4xf32> to vector<16x4xf32>
    %5 = vector.extract_strided_slice %3 {offsets = [1, 0], sizes = [16, 4], strides = [1, 1]} : vector<18x4xf32> to vector<16x4xf32>
    %6 = vector.extract_strided_slice %3 {offsets = [2, 0], sizes = [16, 4], strides = [1, 1]} : vector<18x4xf32> to vector<16x4xf32>
    %7 = tpu.concatenate %4, %5, %6 in 1 : vector<16x4xf32>, vector<16x4xf32>, vector<16x4xf32> -> vector<16x12xf32>
    %8 = arith.truncf %7 : vector<16x12xf32> to vector<16x12xbf16>
    %c0_2 = arith.constant 0 : index
    %c0_3 = arith.constant 0 : index
    %9 = vector.load %arg2[%c0_2, %c0_3] : memref<12x32xbf16, #tpu.memory_space<vmem>>, vector<12x32xbf16>
    %cst_4 = arith.constant dense<0.000000e+00> : vector<16x32xf32>
    %10 = tpu.matmul %8, %9, %cst_4 {dimension_numbers = #tpu.dot_dimension_numbers<[1], [0], [0], [1], [0, 0, 1, 1], [], []>} : vector<16x12xbf16>, vector<12x32xbf16>, vector<16x32xf32> -> vector<16x32xf32>
    %c0_5 = arith.constant 0 : index
    %c0_6 = arith.constant 0 : index
    %11 = vector.load %arg3[%c0_5, %c0_6] : memref<1x32xf32, #tpu.memory_space<vmem>>, vector<1x32xf32>
    %12 = vector.broadcast %11 : vector<1x32xf32> to vector<16x32xf32>
    %13 = arith.addf %10, %12 : vector<16x32xf32>
    %cst_7 = arith.constant 0.000000e+00 : f32
    %14 = vector.broadcast %cst_7 : f32 to vector<16x32xf32>
    %15 = arith.maximumf %13, %14 : vector<16x32xf32>
    %cst_8 = arith.constant 0.000000e+00 : f32
    %16 = vector.broadcast %cst_8 : f32 to vector<1x32xf32>
    %17 = tpu.concatenate %16, %15, %16 in 0 : vector<1x32xf32>, vector<16x32xf32>, vector<1x32xf32> -> vector<18x32xf32>
    %18 = vector.extract_strided_slice %17 {offsets = [0, 0], sizes = [16, 32], strides = [1, 1]} : vector<18x32xf32> to vector<16x32xf32>
    %19 = vector.extract_strided_slice %17 {offsets = [1, 0], sizes = [16, 32], strides = [1, 1]} : vector<18x32xf32> to vector<16x32xf32>
    %20 = vector.extract_strided_slice %17 {offsets = [2, 0], sizes = [16, 32], strides = [1, 1]} : vector<18x32xf32> to vector<16x32xf32>
    %21 = tpu.concatenate %18, %19, %20 in 1 : vector<16x32xf32>, vector<16x32xf32>, vector<16x32xf32> -> vector<16x96xf32>
    %22 = arith.truncf %21 : vector<16x96xf32> to vector<16x96xbf16>
    %c0_9 = arith.constant 0 : index
    %c0_10 = arith.constant 0 : index
    %23 = vector.load %arg4[%c0_9, %c0_10] : memref<96x32xbf16, #tpu.memory_space<vmem>>, vector<96x32xbf16>
    %cst_11 = arith.constant dense<0.000000e+00> : vector<16x32xf32>
    %24 = tpu.matmul %22, %23, %cst_11 {dimension_numbers = #tpu.dot_dimension_numbers<[1], [0], [0], [1], [0, 0, 1, 1], [], []>} : vector<16x96xbf16>, vector<96x32xbf16>, vector<16x32xf32> -> vector<16x32xf32>
    %c0_12 = arith.constant 0 : index
    %c0_13 = arith.constant 0 : index
    %25 = vector.load %arg5[%c0_12, %c0_13] : memref<1x32xf32, #tpu.memory_space<vmem>>, vector<1x32xf32>
    %26 = vector.broadcast %25 : vector<1x32xf32> to vector<16x32xf32>
    %27 = arith.addf %24, %26 : vector<16x32xf32>
    %28 = arith.truncf %1 : vector<16x4xf32> to vector<16x4xbf16>
    %c0_14 = arith.constant 0 : index
    %c0_15 = arith.constant 0 : index
    %29 = vector.load %arg6[%c0_14, %c0_15] : memref<4x32xbf16, #tpu.memory_space<vmem>>, vector<4x32xbf16>
    %cst_16 = arith.constant dense<0.000000e+00> : vector<16x32xf32>
    %30 = tpu.matmul %28, %29, %cst_16 {dimension_numbers = #tpu.dot_dimension_numbers<[1], [0], [0], [1], [0, 0, 1, 1], [], []>} : vector<16x4xbf16>, vector<4x32xbf16>, vector<16x32xf32> -> vector<16x32xf32>
    %c0_17 = arith.constant 0 : index
    %c0_18 = arith.constant 0 : index
    %31 = vector.load %arg7[%c0_17, %c0_18] : memref<1x32xf32, #tpu.memory_space<vmem>>, vector<1x32xf32>
    %32 = vector.broadcast %31 : vector<1x32xf32> to vector<16x32xf32>
    %33 = arith.addf %30, %32 : vector<16x32xf32>
    %34 = arith.addf %27, %33 : vector<16x32xf32>
    %cst_19 = arith.constant 0.000000e+00 : f32
    %35 = vector.broadcast %cst_19 : f32 to vector<16x32xf32>
    %36 = arith.maximumf %34, %35 : vector<16x32xf32>
    %cst_20 = arith.constant 0.000000e+00 : f32
    %37 = vector.broadcast %cst_20 : f32 to vector<1x32xf32>
    %38 = tpu.concatenate %37, %36, %37 in 0 : vector<1x32xf32>, vector<16x32xf32>, vector<1x32xf32> -> vector<18x32xf32>
    %39 = vector.extract_strided_slice %38 {offsets = [0, 0], sizes = [16, 32], strides = [1, 1]} : vector<18x32xf32> to vector<16x32xf32>
    %40 = vector.extract_strided_slice %38 {offsets = [1, 0], sizes = [16, 32], strides = [1, 1]} : vector<18x32xf32> to vector<16x32xf32>
    %41 = vector.extract_strided_slice %38 {offsets = [2, 0], sizes = [16, 32], strides = [1, 1]} : vector<18x32xf32> to vector<16x32xf32>
    %42 = tpu.concatenate %39, %40, %41 in 1 : vector<16x32xf32>, vector<16x32xf32>, vector<16x32xf32> -> vector<16x96xf32>
    %43 = arith.truncf %42 : vector<16x96xf32> to vector<16x96xbf16>
    %c0_21 = arith.constant 0 : index
    %c0_22 = arith.constant 0 : index
    %44 = vector.load %arg8[%c0_21, %c0_22] : memref<96x32xbf16, #tpu.memory_space<vmem>>, vector<96x32xbf16>
    %cst_23 = arith.constant dense<0.000000e+00> : vector<16x32xf32>
    %45 = tpu.matmul %43, %44, %cst_23 {dimension_numbers = #tpu.dot_dimension_numbers<[1], [0], [0], [1], [0, 0, 1, 1], [], []>} : vector<16x96xbf16>, vector<96x32xbf16>, vector<16x32xf32> -> vector<16x32xf32>
    %c0_24 = arith.constant 0 : index
    %c0_25 = arith.constant 0 : index
    %46 = vector.load %arg9[%c0_24, %c0_25] : memref<1x32xf32, #tpu.memory_space<vmem>>, vector<1x32xf32>
    %47 = vector.broadcast %46 : vector<1x32xf32> to vector<16x32xf32>
    %48 = arith.addf %45, %47 : vector<16x32xf32>
    %cst_26 = arith.constant 0.000000e+00 : f32
    %49 = vector.broadcast %cst_26 : f32 to vector<16x32xf32>
    %50 = arith.maximumf %48, %49 : vector<16x32xf32>
    %cst_27 = arith.constant 0.000000e+00 : f32
    %51 = vector.broadcast %cst_27 : f32 to vector<1x32xf32>
    %52 = tpu.concatenate %51, %50, %51 in 0 : vector<1x32xf32>, vector<16x32xf32>, vector<1x32xf32> -> vector<18x32xf32>
    %53 = vector.extract_strided_slice %52 {offsets = [0, 0], sizes = [16, 32], strides = [1, 1]} : vector<18x32xf32> to vector<16x32xf32>
    %54 = vector.extract_strided_slice %52 {offsets = [1, 0], sizes = [16, 32], strides = [1, 1]} : vector<18x32xf32> to vector<16x32xf32>
    %55 = vector.extract_strided_slice %52 {offsets = [2, 0], sizes = [16, 32], strides = [1, 1]} : vector<18x32xf32> to vector<16x32xf32>
    %56 = tpu.concatenate %53, %54, %55 in 1 : vector<16x32xf32>, vector<16x32xf32>, vector<16x32xf32> -> vector<16x96xf32>
    %57 = arith.truncf %56 : vector<16x96xf32> to vector<16x96xbf16>
    %c0_28 = arith.constant 0 : index
    %c0_29 = arith.constant 0 : index
    %58 = vector.load %arg10[%c0_28, %c0_29] : memref<96x32xbf16, #tpu.memory_space<vmem>>, vector<96x32xbf16>
    %cst_30 = arith.constant dense<0.000000e+00> : vector<16x32xf32>
    %59 = tpu.matmul %57, %58, %cst_30 {dimension_numbers = #tpu.dot_dimension_numbers<[1], [0], [0], [1], [0, 0, 1, 1], [], []>} : vector<16x96xbf16>, vector<96x32xbf16>, vector<16x32xf32> -> vector<16x32xf32>
    %c0_31 = arith.constant 0 : index
    %c0_32 = arith.constant 0 : index
    %60 = vector.load %arg11[%c0_31, %c0_32] : memref<1x32xf32, #tpu.memory_space<vmem>>, vector<1x32xf32>
    %61 = vector.broadcast %60 : vector<1x32xf32> to vector<16x32xf32>
    %62 = arith.addf %59, %61 : vector<16x32xf32>
    %63 = arith.addf %62, %36 : vector<16x32xf32>
    %cst_33 = arith.constant 0.000000e+00 : f32
    %64 = vector.broadcast %cst_33 : f32 to vector<16x32xf32>
    %65 = arith.maximumf %63, %64 : vector<16x32xf32>
    %c0_34 = arith.constant 0 : index
    %c0_35 = arith.constant 0 : index
    %c0_36 = arith.constant 0 : index
    %66 = vector.load %arg12[%c0_34, %c0_35, %c0_36] : memref<1x16x32xf32, #tpu.memory_space<vmem>>, vector<1x16x32xf32>
    %67 = vector.shape_cast %66 : vector<1x16x32xf32> to vector<16x32xf32>
    %68 = vector.shape_cast %65 : vector<16x32xf32> to vector<1x16x32xf32>
    tpu.vector_store %arg12[%c0_34, %c0_35, %c0_36], %68 {strides = array<i32>} : memref<1x16x32xf32, #tpu.memory_space<vmem>>, vector<1x16x32xf32>,
    return
  }
  func.func @transform_0(%arg0: i32) -> (i32, i32, i32) {
    %c0_i32 = arith.constant 0 : i32
    %c0_i32_0 = arith.constant 0 : i32
    %c0_i32_1 = arith.constant 0 : i32
    return %arg0, %c0_i32, %c0_i32_0 : i32, i32, i32
  }
  func.func @transform_1(%arg0: i32) -> (i32, i32) {
    %c0_i32 = arith.constant 0 : i32
    %c0_i32_0 = arith.constant 0 : i32
    %c0_i32_1 = arith.constant 0 : i32
    return %c0_i32, %c0_i32_0 : i32, i32
  }
  func.func @transform_2(%arg0: i32) -> (i32, i32) {
    %c0_i32 = arith.constant 0 : i32
    %c0_i32_0 = arith.constant 0 : i32
    %c0_i32_1 = arith.constant 0 : i32
    return %c0_i32, %c0_i32_0 : i32, i32
  }
  func.func @transform_3(%arg0: i32) -> (i32, i32) {
    %c0_i32 = arith.constant 0 : i32
    %c0_i32_0 = arith.constant 0 : i32
    %c0_i32_1 = arith.constant 0 : i32
    return %c0_i32, %c0_i32_0 : i32, i32
  }
  func.func @transform_4(%arg0: i32) -> (i32, i32) {
    %c0_i32 = arith.constant 0 : i32
    %c0_i32_0 = arith.constant 0 : i32
    %c0_i32_1 = arith.constant 0 : i32
    return %c0_i32, %c0_i32_0 : i32, i32
  }
  func.func @transform_5(%arg0: i32) -> (i32, i32) {
    %c0_i32 = arith.constant 0 : i32
    %c0_i32_0 = arith.constant 0 : i32
    %c0_i32_1 = arith.constant 0 : i32
    return %c0_i32, %c0_i32_0 : i32, i32
  }
  func.func @transform_6(%arg0: i32) -> (i32, i32) {
    %c0_i32 = arith.constant 0 : i32
    %c0_i32_0 = arith.constant 0 : i32
    %c0_i32_1 = arith.constant 0 : i32
    return %c0_i32, %c0_i32_0 : i32, i32
  }
  func.func @transform_7(%arg0: i32) -> (i32, i32) {
    %c0_i32 = arith.constant 0 : i32
    %c0_i32_0 = arith.constant 0 : i32
    %c0_i32_1 = arith.constant 0 : i32
    return %c0_i32, %c0_i32_0 : i32, i32
  }
  func.func @transform_8(%arg0: i32) -> (i32, i32) {
    %c0_i32 = arith.constant 0 : i32
    %c0_i32_0 = arith.constant 0 : i32
    %c0_i32_1 = arith.constant 0 : i32
    return %c0_i32, %c0_i32_0 : i32, i32
  }
  func.func @transform_9(%arg0: i32) -> (i32, i32) {
    %c0_i32 = arith.constant 0 : i32
    %c0_i32_0 = arith.constant 0 : i32
    %c0_i32_1 = arith.constant 0 : i32
    return %c0_i32, %c0_i32_0 : i32, i32
  }
  func.func @transform_10(%arg0: i32) -> (i32, i32) {
    %c0_i32 = arith.constant 0 : i32
    %c0_i32_0 = arith.constant 0 : i32
    %c0_i32_1 = arith.constant 0 : i32
    return %c0_i32, %c0_i32_0 : i32, i32
  }
  func.func @transform_11(%arg0: i32) -> (i32, i32, i32) {
    %c0_i32 = arith.constant 0 : i32
    %c0_i32_0 = arith.constant 0 : i32
    %c0_i32_1 = arith.constant 0 : i32
    return %arg0, %c0_i32, %c0_i32_0 : i32, i32, i32
  }
}

</mosaic_0001>

<bundles_post_ra>
// kernel: _lambda_.1
= control target key start
LH: loop header
LB: loop body
LE: loop exit
PB: predicated region body
PF: predicated region fallthrough
CT: control target
= control target key end

     0   :  { %16 = vsyncpa [#allocation3], 0  ;;  %s1718_s0 = inlined_call_operand.vmem [shape: f32[2,16,4], index: 0, kind: input, shape index: {}]   ;;  %s1719_s1 = inlined_call_operand.vmem [shape: bf16[12,32], index: 1, kind: input, shape index: {}]   ;;  %s1720_s2 = inlined_call_operand.vmem [shape: f32[1,32], index: 2, kind: input, shape index: {}]   ;;  %s1721_s3 = inlined_call_operand.vmem [shape: bf16[96,32], index: 3, kind: input, shape index: {}]   ;;  %s1722_s4 = inlined_call_operand.vmem [shape: f32[1,32], index: 4, kind: input, shape index: {}]   ;;  %s1723_s5 = inlined_call_operand.vmem [shape: bf16[4,32], index: 5, kind: input, shape index: {}]   ;;  %s1724_s6 = inlined_call_operand.vmem [shape: f32[1,32], index: 6, kind: input, shape index: {}]   ;;  %s1725_s7 = inlined_call_operand.vmem [shape: bf16[96,32], index: 7, kind: input, shape index: {}]   ;;  %s1726_s8 = inlined_call_operand.vmem [shape: f32[1,32], index: 8, kind: input, shape index: {}]   ;;  %s1727_s9 = inlined_call_operand.vmem [shape: bf16[96,32], index: 9, kind: input, shape index: {}]   ;;  %s1728_s10 = inlined_call_operand.vmem [shape: f32[1,32], index: 10, kind: input, shape index: {}]   ;;  %s1729_s11 = inlined_call_operand.hbm [shape: f32[2,16,32], index: 11, kind: output, shape index: {}]  }
   0x1   :  { %18 = vsyncpa [#allocation3 + $0x1], 0  ;;  %s1431_s17 = smov 0   ;;  %s1433_s18 = smov 0  }
   0x2   :  { %s1435_s19 = smov 0   ;;  %s1437_s20 = smov 0  }
   0x3 LB: > { %s1452_s21 = sadd.s32 4294967295, %s1361_s20   ;;  %s1058_s22 = sadd.s32 4294967294, %s1361_s20   ;;  %s1361_s20 = sphi %s1437_s20, %s1737_s20   ;;  %s1357_s19 = sphi %s1435_s19, %s1736_s19   ;;  %s1353_s18 = sphi %s1433_s18, %s1735_s18   ;;  %s1349_s17 = sphi %s1431_s17, %s1734_s17  }
   0x4   : > { %s1456_s23 = sadd.s32 1, %s1361_s20   ;;  %s267_s24 = sadd.s32 1, %s1357_s19 }
   0x5   : > { %s264_s25 = ssub.s32 %s1361_s20, %s1456_s23  ;;  %p277_p0 = scmp.ne.s32.totalorder %s1357_s19, %s1353_s18 }
   0x6   : > { %p265_p1 = scmp.eq.s32.totalorder %s264_s25, 0  ;;  %p278_p2 = scmp.eq.s32.totalorder %s1452_s21, 1 }
   0x7   : > { %p283_p3 = scmp.ne.s32.totalorder %s1353_s18, %s1349_s17  ;;  %p284_p4 = scmp.eq.s32.totalorder %s1058_s22, 1 }
   0x8   : > { %s1467_s26 = scalar_select %p265_p1, %s1357_s19, %s267_s24  }
   0x9   : > { %p1469_p5 = por %p278_p2, %p277_p0  ;;  %p1473_p6 = por %p284_p4, %p283_p3 }
   0xa   : > { %p1061_p7 = scmp.ge.s32.totalorder %s1361_s20, 1  ;;  %p340_p8 = scmp.lt.s32.totalorder %s1361_s20, 3 }
   0xc   : > { %p341_p9 = pnand %p1061_p7, %p340_p8 }
   0xd   : > { %p380_p10 = scmp.lt.s32.totalorder (!%p341_p9), %s1452_s21, 1  ;;  %vm390_vm0 = vcmask (!%p341_p9), 1040384   ;;  %v1280_v0 = vld [vmem:[%s1719_s1] sm:$0x3f] (!%p341_p9)   ;;  %vm413_vm1 = vcmask (!%p341_p9), 1045504   ;;  %vm401_vm2 = vcmask (!%p341_p9), 1046528  }
   0xe   : > { %344 = sbr.rel (%p341_p9) target bundleno = 1449 (0x5a9), region = 64  ;;  %v1363_v5 = vmov (!%p341_p9), 0.0   ;;  %v451_v6 = vsel (!%p341_p9), %vm413_vm1, %v1280_v0, 0  ;;  %vm1364_vm3 = vmmov (!%p341_p9), 0   ;;  %s1365_s22 = smov (!%p341_p9), 4   ;;  %vm425_vm4 = vcmask (!%p341_p9), 31744  }
   0xf   : > { %1126 = vmatprep.subr.bf16.mxu1 (!%p341_p9), %v1363_v5  ;;  %1154 = vmatprep.subr.bf16.mxu0 (!%p341_p9), %v1363_v5  ;;  %s1730_s24 = smov (!%p341_p9), 8   ;;  %vm428_vm5 = vcmask (!%p341_p9), 64512   ;;  %vm446_vm6 = vcmask (!%p341_p9), 97280   ;;  %v1281_v33 = vld [vmem:[%s1721_s3] sm:$0xff] (!%p341_p9)   ;;  %v1282_v34 = vld [vmem:[%s1721_s3 + $0x8] sm:$0xff] (!%p341_p9)   ;;  %v1283_v35 = vld [vmem:[%s1721_s3 + $0x10] sm:$0xff] (!%p341_p9)  }
  0x10   : > { %1127 = vmatpush3.bf16.msra.mxu1 (!%p341_p9), %v451_v6  ;;  %1128 = vmatprep.mubr.msk.bf16.mxu1 (!%p341_p9), %vm1364_vm3, %v1363_v5  ;;  %v1284_v36 = vld [vmem:[%s1721_s3 + $0x18] sm:$0xff] (!%p341_p9)   ;;  %v1065_v37 = vld [vmem:[%s1720_s2] ss:$0 sm:$0xff] (!%p341_p9)  ;;  %v1286_v48 = vld [vmem:[%s1721_s3 + $0x28] sm:$0xff] (!%p341_p9)   ;;  %s1368_s15 = smov (!%p341_p9), 64   ;;  %vm530_vm7 = vcmask (!%p341_p9), 261120  }
  0x11   : > { %1132 = vmatprep.subr.bf16.mxu1 (!%p341_p9), %v1363_v5  ;;  %1166 = vmatprep.mubr.msk.bf16.mxu0 (!%p341_p9), %vm1364_vm3, %v1363_v5  ;;  %v1285_v42 = vld [vmem:[%s1721_s3 + $0x20] sm:$0xff] (!%p341_p9)   ;;  %vm533_vm8 = vcmask (!%p341_p9), 523264   ;;  %vm649_vm9 = vcmask (!%p341_p9), 1041408   ;;  %vm592_vm10 = vcmask (!%p341_p9), 785408   ;;  %s1100_s25 = sshll.u32 (!%p341_p9), %s1452_s21, 8 }
  0x12   : > { %s1670_s16 = scalar_lea.hbm (!%p341_p9), %s1729_s11, %s1100_s25 }
  0x15   : > { %s381_s29 = scalar_select %p380_p10, %s1452_s21, 1 }
  0x17   : > { %s1099_s30 = sshll.u32 %s381_s29, 4 }
  0x18   : > { %s384_s14 = scalar_lea.vmem %s1718_s0, %s1099_s30 }
  0x19   : > { %v1487_v1 = vld [vmem:[%s384_s14] sm:$0xff]  ;;  %v1489_v2 = vld [vmem:[%s384_s14 + $0x8] sm:$0xff]  ;;  %s1367_s14 = smov 32  }
  0x1a   : > { %v391_v3 = vrot.slane %v1487_v1, 7  ;;  %v392_v4 = vrot.slane %v1489_v2, 7 }
  0x1c   : > { %v393_v7 = vsel %vm390_vm0, %v391_v3, %v392_v4  ;;  %v397_v8 = vsel %vm390_vm0, 0.0, %v391_v3  ;;  %v398_v9 = vsel %vm390_vm0, %v392_v4, 0.0 }
  0x1d   : > { %v402_v10 = vrot.slane %v397_v8, 1  ;;  %v403_v11 = vrot.slane %v393_v7, 1  ;;  %v405_v12 = vrot.slane %v398_v9, 1  ;;  %v417_v13 = vrot.slane %v398_v9, 2 }
  0x1e   : > { %v414_v14 = vrot.slane %v397_v8, 2  ;;  %v415_v15 = vrot.slane %v393_v7, 2 }
  0x1f   : > { %v404_v16 = vsel %vm401_vm2, %v402_v10, %v403_v11  ;;  %v406_v17 = vsel %vm401_vm2, %v403_v11, %v405_v12  ;;  %v638_v10 = vld [vmem:[%s1723_s5] sm:$0x3] }
  0x20   : > { %v1240_v18 = vpack.i.bf16 %v406_v17, %v404_v16  ;;  %v416_v19 = vsel %vm413_vm1, %v414_v14, %v415_v15  ;;  %v418_v20 = vsel %vm413_vm1, %v415_v15, %v417_v13  ;;  %v651_v16 = vsel %vm649_vm9, %v638_v10, 0 }
  0x21   : > { %v1245_v21 = vpack.i.bf16 %v418_v20, %v416_v19  ;;  %v637_v17 = vpack.c.bf16 %v1489_v2, %v1487_v1  ;;  %v1288_v19 = vld [vmem:[%s1725_s7 + $0x8] sm:$0xff]   ;;  %v1289_v20 = vld [vmem:[%s1725_s7 + $0x10] sm:$0xff]   ;;  %v1290_v1 = vld [vmem:[%s1725_s7 + $0x18] sm:$0xff]  }
  0x22   : > { %1241 = vrot.lane.b32.xlu0 %v1240_v18, %s1365_s22  ;;  %v1287_v18 = vld [vmem:[%s1725_s7] sm:$0xff]  }
  0x23   : > { %1155 = vmatpush3.bf16.msra.mxu0 %v1287_v18  ;;  %v1291_v2 = vld [vmem:[%s1725_s7 + $0x20] sm:$0xff]  }
  0x24   : > { %1156 = vmatprep.subr.bf16.mxu0 %v1363_v5 }
  0x26   : > { %1246 = vrot.lane.b32.xlu0 %v1245_v21, %s1730_s24  ;;  %v1068_v21 = vld [vmem:[%s1722_s4] ss:$0 sm:$0xff]  ;;  %s1369_s24 = smov [#allocation2]  }
  0x27   : > { %1157 = vmatpush3.bf16.msra.mxu0 %v1288_v19  ;;  %s1303_s22 = sshll.u32 %s1369_s24, 4  ;;  %s1304_s22 = int_to_ptr.vmem [resolvable:$false] %s1303_s22 }
  0x28   : > { %1158 = vmatprep.subr.bf16.mxu0 %v1363_v5  ;;  %s1305_s25 = scalar_lea.vmem %s1304_s22, 512 }
  0x2b   : > { %1159 = vmatpush3.bf16.msra.mxu0 %v1289_v20 }
  0x2c   : > { %1160 = vmatprep.subr.bf16.mxu0 %v1363_v5 }
  0x2f   : > { %1161 = vmatpush3.bf16.msra.mxu0 %v1290_v1 }
  0x30   : > { %1162 = vmatprep.subr.bf16.mxu0 %v1363_v5 }
  0x33   : > { %1163 = vmatpush3.bf16.msra.mxu0 %v1291_v2 }
  0x34   : > { %1164 = vmatprep.subr.bf16.mxu0 %v1363_v5 }
  0x94   : > { %v1242_v22 = vpop.permute.xlu0 %1241 }
  0x95   : > { %v1244_v23 = vunpack.i.h.bf16 %v1242_v22  ;;  %v1243_v24 = vunpack.i.l.bf16 %v1242_v22  ;;  %v1076_v22 = vld [vmem:[%s1724_s6] ss:$0 sm:$0xff] }
  0x97   : > { %v427_v28 = vsel %vm425_vm4, %v393_v7, %v1244_v23  ;;  %v426_v29 = vsel %vm425_vm4, %v397_v8, %v1243_v24  ;;  %v1186_v23 = vadd.f32 %v1076_v22, %v1068_v21 }
  0x98   : > { %v1247_v25 = vpop.permute.xlu0 %1246 }
  0x99   : > { %v1249_v26 = vunpack.i.h.bf16 %v1247_v25  ;;  %v1248_v27 = vunpack.i.l.bf16 %v1247_v25 }
  0x9b   : > { %v429_v30 = vsel %vm428_vm5, %v426_v29, %v1248_v27  ;;  %v430_v31 = vsel %vm428_vm5, %v427_v28, %v1249_v26 }
  0x9c   : > { %v431_v32 = vpack.c.bf16 %v430_v31, %v429_v30  ;;  %v1292_v31 = vld [vmem:[%s1725_s7 + $0x28] sm:$0xff]  }
  0x9d   : > { %1165 = vmatpush3.bf16.msra.mxu0 %v1292_v31 }
  0x9e   : > { %1129 = vmatmul.mubr.msk.bf16.vlgmr.msra.gmra.mrb[0].mxu1 %vm446_vm6, %v431_v32  ;;  %1170 = vmatprep.subr.bf16.mxu0 %v1363_v5 }
  0x9f   : > { %1144 = vmatprep.mubr.msk.bf16.mxu1 %vm1364_vm3, %v1363_v5  ;;  %1133 = vmatpush3.bf16.msra.mxu1 %v1281_v33 }
  0xa0   : > { %1134 = vmatprep.subr.bf16.mxu1 %v1363_v5 }
  0xa3   : > { %1135 = vmatpush3.bf16.msra.mxu1 %v1282_v34 }
  0xa4   : > { %1136 = vmatprep.subr.bf16.mxu1 %v1363_v5 }
  0xa7   : > { %1137 = vmatpush3.bf16.msra.mxu1 %v1283_v35 }
  0xa8   : > { %1138 = vmatprep.subr.bf16.mxu1 %v1363_v5 }
  0xab   : > { %1139 = vmatpush3.bf16.msra.mxu1 %v1284_v36 }
  0xac   : > { %1140 = vmatprep.subr.bf16.mxu1 %v1363_v5 }
  0xaf   : > { %1141 = vmatpush3.bf16.msra.mxu1 %v1285_v42 }
  0xb0   : > { %1142 = vmatprep.subr.bf16.mxu1 %v1363_v5 }
  0xb3   : > { %1143 = vmatpush3.bf16.msra.mxu1 %v1286_v48 }
  0xb4   : > { %1148 = vmatprep.subr.bf16.mxu1 %v1363_v5 }
 0x171   : > { %v487_v38 = vpop.f32.mrb[0].mxu1 }
 0x172   : > { %v488_v39 = vadd.f32 %v1065_v37, %v487_v38  ;;  %v1130_v40 = vpop.f32.mrb[1].mxu1 }
 0x173   : > { %v490_v41 = vpop.f32.mrb[2].mxu1 }
 0x174   : > { %v494_v43 = vmax.f32 %v488_v39, 0.0  ;;  %v491_v44 = vadd.f32 %v1065_v37, %v490_v41  ;;  %v1131_v45 = vpop.f32.mrb[3].mxu1 }
 0x176   : > { %v498_v46 = vrot.slane %v494_v43, 7  ;;  %v495_v47 = vmax.f32 %v491_v44, 0.0 }
 0x178   : > { %v504_v49 = vsel %vm390_vm0, 0.0, %v498_v46  ;;  %v499_v50 = vrot.slane %v495_v47, 7 }
 0x179   : > { %v508_v51 = vrot.slane %v504_v49, 1  ;;  %v519_v58 = vrot.slane %v504_v49, 2 }
 0x17a   : > { %v500_v52 = vsel %vm390_vm0, %v498_v46, %v499_v50  ;;  %v505_v53 = vsel %vm390_vm0, %v499_v50, 0.0 }
 0x17b   : > { %v511_v54 = vrot.slane %v505_v53, 1  ;;  %v520_v55 = vrot.slane %v500_v52, 2  ;;  %v522_v56 = vrot.slane %v505_v53, 2  ;;  %v509_v57 = vrot.slane %v500_v52, 1 }
 0x17d   : > { %v510_v59 = vsel %vm401_vm2, %v508_v51, %v509_v57  ;;  %v512_v60 = vsel %vm401_vm2, %v509_v57, %v511_v54  ;;  %v521_v62 = vsel %vm413_vm1, %v519_v58, %v520_v55  ;;  %v523_v63 = vsel %vm413_vm1, %v520_v55, %v522_v56 }
 0x17e   : > { %v1250_v61 = vpack.i.bf16 %v512_v60, %v510_v59  ;;  %v1255_v0 = vpack.i.bf16 %v523_v63, %v521_v62  ;;  %v1294_v62 = vld [vmem:[%s1727_s9 + $0x8] sm:$0xff]   ;;  %v1295_v63 = vld [vmem:[%s1727_s9 + $0x10] sm:$0xff]  }
 0x180   : > { %1251 = vrot.lane.b32.xlu1 %v1250_v61, %s1367_s14  ;;  %v1293_v61 = vld [vmem:[%s1727_s9] sm:$0xff]  }
 0x184   : > { %1256 = vrot.lane.b32.xlu1 %v1255_v0, %s1368_s15  ;;  %v1296_v0 = vld [vmem:[%s1727_s9 + $0x18] sm:$0xff]  }
 0x1f2   : > { %v1252_v3 = vpop.permute.xlu1 %1251 }
 0x1f3   : > { %v1254_v4 = vunpack.i.h.bf16 %v1252_v3  ;;  %v1253_v6 = vunpack.i.l.bf16 %v1252_v3  ;;  %v1297_v3 = vld [vmem:[%s1727_s9 + $0x20] sm:$0xff]  }
 0x1f5   : > { %v532_v11 = vsel %vm530_vm7, %v500_v52, %v1254_v4  ;;  %v531_v12 = vsel %vm530_vm7, %v504_v49, %v1253_v6  ;;  %v1078_v4 = vld [vmem:[%s1726_s8] ss:$0 sm:$0xff] }
 0x1f6   : > { %v1257_v7 = vpop.permute.xlu1 %1256 }
 0x1f7   : > { %v1259_v8 = vunpack.i.h.bf16 %v1257_v7  ;;  %v1258_v9 = vunpack.i.l.bf16 %v1257_v7 }
 0x1f9   : > { %v534_v13 = vsel %vm533_vm8, %v531_v12, %v1258_v9  ;;  %v535_v14 = vsel %vm533_vm8, %v532_v11, %v1259_v8 }
 0x1fa   : > { %v536_v15 = vpack.c.bf16 %v535_v14, %v534_v13  ;;  %v1298_v13 = vld [vmem:[%s1727_s9 + $0x28] sm:$0xff]  }
 0x1fc   : > { %1145 = vmatmul.mubr.msk.bf16.vlgmr.msra.gmra.mrb[4].mxu1 %vm592_vm10, %v536_v15 }
 0x1fd   : > { %1149 = vmatpush3.bf16.msra.mxu1 %v651_v16  ;;  %1150 = vmatprep.mubr.msk.bf16.mxu1 %vm1364_vm3, %v1363_v5 }
 0x208   : > { %1151 = vmatmul.mubr.msk.bf16.vlgmr.msra.gmra.mrb[4].mxu1 %vm425_vm4, %v637_v17 }
 0x2db   : > { %v687_v24 = vpop.f32.mrb[4].mxu1 }
 0x2dc   : > { %v1588_v25 = vadd.f32 %v1186_v23, %v687_v24  ;;  %v1152_v26 = vpop.f32.mrb[5].mxu1 }
 0x2dd   : > { %v690_v27 = vpop.f32.mrb[6].mxu1 }
 0x2de   : > { %v696_v28 = vmax.f32 %v1588_v25, 0.0  ;;  %v1591_v29 = vadd.f32 %v1186_v23, %v690_v27  ;;  %v1153_v30 = vpop.f32.mrb[7].mxu1 }
 0x2e0   : > { %v700_v32 = vrot.slane %v696_v28, 7  ;;  %v697_v33 = vmax.f32 %v1591_v29, 0.0 }
 0x2e2   : > { %v706_v34 = vsel %vm390_vm0, 0.0, %v700_v32  ;;  %v701_v35 = vrot.slane %v697_v33, 7 }
 0x2e3   : > { %v710_v36 = vrot.slane %v706_v34, 1  ;;  %v721_v37 = vrot.slane %v706_v34, 2 }
 0x2e4   : > { %v702_v38 = vsel %vm390_vm0, %v700_v32, %v701_v35  ;;  %v707_v39 = vsel %vm390_vm0, %v701_v35, 0.0 }
 0x2e5   : > { %v713_v40 = vrot.slane %v707_v39, 1  ;;  %v724_v41 = vrot.slane %v707_v39, 2  ;;  %v722_v42 = vrot.slane %v702_v38, 2  ;;  %v711_v43 = vrot.slane %v702_v38, 1 }
 0x2e7   : > { %v723_v44 = vsel %vm413_vm1, %v721_v37, %v722_v42  ;;  %v725_v45 = vsel %vm413_vm1, %v722_v42, %v724_v41  ;;  %v712_v46 = vsel %vm401_vm2, %v710_v36, %v711_v43  ;;  %v714_v47 = vsel %vm401_vm2, %v711_v43, %v713_v40 }
 0x2e8   : > { %v1265_v48 = vpack.i.bf16 %v725_v45, %v723_v44  ;;  %v1260_v49 = vpack.i.bf16 %v714_v47, %v712_v46  ;;  %v1086_v44 = vld [vmem:[%s1728_s10] ss:$0 sm:$0xff] }
 0x2ea   : > { %1266 = vrot.lane.b32.xlu1 %v1265_v48, %s1368_s15  ;;  %1261 = vrot.lane.b32.xlu0 %v1260_v49, %s1367_s14 }
 0x35c   : > { %v1267_v50 = vpop.permute.xlu1 %1266  ;;  %v1262_v51 = vpop.permute.xlu0 %1261 }
 0x35d   : > { %v1269_v52 = vunpack.i.h.bf16 %v1267_v50  ;;  %v1268_v53 = vunpack.i.l.bf16 %v1267_v50  ;;  %v1264_v54 = vunpack.i.h.bf16 %v1262_v51  ;;  %v1263_v55 = vunpack.i.l.bf16 %v1262_v51 }
 0x35f   : > { %v733_v56 = vsel %vm530_vm7, %v702_v38, %v1264_v54  ;;  %v732_v57 = vsel %vm530_vm7, %v706_v34, %v1263_v55 }
 0x360   : > { %v734_v58 = vsel %vm533_vm8, %v732_v57, %v1268_v53  ;;  %v735_v59 = vsel %vm533_vm8, %v733_v56, %v1269_v52 }
 0x361   : > { %v736_v60 = vpack.c.bf16 %v735_v59, %v734_v58 }
 0x363   : > { %1167 = vmatmul.mubr.msk.bf16.vlgmr.msra.gmra.mrb[0].mxu0 %vm592_vm10, %v736_v60 }
 0x364   : > { %1182 = vmatprep.mubr.msk.bf16.mxu0 %vm1364_vm3, %v1363_v5  ;;  %1171 = vmatpush3.bf16.msra.mxu0 %v1293_v61 }
 0x365   : > { %1172 = vmatprep.subr.bf16.mxu0 %v1363_v5 }
 0x368   : > { %1173 = vmatpush3.bf16.msra.mxu0 %v1294_v62 }
 0x369   : > { %1174 = vmatprep.subr.bf16.mxu0 %v1363_v5 }
 0x36c   : > { %1175 = vmatpush3.bf16.msra.mxu0 %v1295_v63 }
 0x36d   : > { %1176 = vmatprep.subr.bf16.mxu0 %v1363_v5 }
 0x370   : > { %1177 = vmatpush3.bf16.msra.mxu0 %v1296_v0 }
 0x371   : > { %1178 = vmatprep.subr.bf16.mxu0 %v1363_v5 }
 0x374   : > { %1179 = vmatpush3.bf16.msra.mxu0 %v1297_v3 }
 0x375   : > { %1180 = vmatprep.subr.bf16.mxu0 %v1363_v5 }
 0x378   : > { %1181 = vmatpush3.bf16.msra.mxu0 %v1298_v13 }
 0x436   : > { %v829_v6 = vpop.f32.mrb[0].mxu0 }
 0x437   : > { %v830_v7 = vadd.f32 %v1078_v4, %v829_v6  ;;  %v1168_v8 = vpop.f32.mrb[1].mxu0 }
 0x438   : > { %v832_v9 = vpop.f32.mrb[2].mxu0 }
 0x439   : > { %v836_v10 = vmax.f32 %v830_v7, 0.0  ;;  %v833_v11 = vadd.f32 %v1078_v4, %v832_v9  ;;  %v1169_v12 = vpop.f32.mrb[3].mxu0 }
 0x43b   : > { %v840_v14 = vrot.slane %v836_v10, 7  ;;  %v837_v15 = vmax.f32 %v833_v11, 0.0 }
 0x43d   : > { %v846_v5 = vsel %vm390_vm0, 0.0, %v840_v14  ;;  %v841_v16 = vrot.slane %v837_v15, 7 }
 0x43e   : > { %v850_v17 = vrot.slane %v846_v5, 1  ;;  %v861_v18 = vrot.slane %v846_v5, 2 }
 0x43f   : > { %v842_v19 = vsel %vm390_vm0, %v840_v14, %v841_v16  ;;  %v847_v20 = vsel %vm390_vm0, %v841_v16, 0.0 }
 0x440   : > { %v851_v1 = vrot.slane %v842_v19, 1  ;;  %v853_v2 = vrot.slane %v847_v20, 1  ;;  %v862_v21 = vrot.slane %v842_v19, 2  ;;  %v864_v22 = vrot.slane %v847_v20, 2 }
 0x442   : > { %v863_v23 = vsel %vm413_vm1, %v861_v18, %v862_v21  ;;  %v865_v24 = vsel %vm413_vm1, %v862_v21, %v864_v22  ;;  %v852_v26 = vsel %vm401_vm2, %v850_v17, %v851_v1  ;;  %v854_v27 = vsel %vm401_vm2, %v851_v1, %v853_v2 }
 0x443   : > { %v1275_v30 = vpack.i.bf16 %v865_v24, %v863_v23  ;;  %v1270_v31 = vpack.i.bf16 %v854_v27, %v852_v26 }
 0x445   : > { %1276 = vrot.lane.b32.xlu1 %v1275_v30, %s1368_s15  ;;  %1271 = vrot.lane.b32.xlu0 %v1270_v31, %s1367_s14  ;;  %s377_s15 = sand.u32 1, %s1353_s18  }
 0x446   : > { %s1062_s14 = sshll.u32 %s377_s15, 4  ;;  %s1676_s21 = scalar_lea.sflag [#allocation3], %s377_s15 }
 0x447   : > { %s379_s29 = scalar_lea.vmem [#allocation2], %s1062_s14 }
 0x448   : > { %s996_s30 = sshll.u32 %s379_s29, 4  ;;  %s1673_s30 = int_to_ptr.vmem [resolvable:$true] %s996_s30 }
 0x449   : > { %s1299_s14 = scalar_lea.vmem %s1673_s30, 256  ;;  %p1306_p0 = scmp.lt.s32.totalorder %s1673_s30, %s1304_s22 }
 0x44a   : > { %p1300_p11 = scmp.ne.s32.totalorder %s1673_s30, %s1299_s14  ;;  %p1307_p1 = scmp.lt.s32.totalorder %s1305_s25, %s1299_s14 }
 0x44c   : > { %p1301_p12 = pnand %p1300_p11, %p1469_p5  ;;  %p1308_p2 = por %p1307_p1, %p1306_p0 }
 0x44e   : > { %p1302_p13 = pneg %p1301_p12 }
 0x450   : > { %p1309_p3 = pnand %p1308_p2, %p1302_p13 }
 0x4b7   : > { %v1277_v32 = vpop.permute.xlu1 %1276  ;;  %v1272_v34 = vpop.permute.xlu0 %1271 }
 0x4b8   : > { %v1279_v35 = vunpack.i.h.bf16 %v1277_v32  ;;  %v1278_v36 = vunpack.i.l.bf16 %v1277_v32  ;;  %v1274_v37 = vunpack.i.h.bf16 %v1272_v34  ;;  %v1273_v38 = vunpack.i.l.bf16 %v1272_v34 }
 0x4ba   : > { %v873_v39 = vsel %vm530_vm7, %v842_v19, %v1274_v37  ;;  %v872_v40 = vsel %vm530_vm7, %v846_v5, %v1273_v38 }
 0x4bb   : > { %v875_v41 = vsel %vm533_vm8, %v873_v39, %v1279_v35  ;;  %v874_v42 = vsel %vm533_vm8, %v872_v40, %v1278_v36 }
 0x4bc   : > { %v876_v43 = vpack.c.bf16 %v875_v41, %v874_v42 }
 0x4be   : > { %1183 = vmatmul.mubr.msk.bf16.vlgmr.msra.gmra.mrb[4].mxu0 %vm592_vm10, %v876_v43 }
 0x591   : > { %v969_v45 = vpop.f32.mrb[4].mxu0 }
 0x592   : > { %v970_v46 = vadd.f32 %v1086_v44, %v969_v45  ;;  %v1184_v47 = vpop.f32.mrb[5].mxu0 }
 0x593   : > { %v972_v48 = vpop.f32.mrb[6].mxu0 }
 0x594   : > { %v976_v49 = vadd.f32 %v970_v46, %v696_v28  ;;  %v973_v50 = vadd.f32 %v1086_v44, %v972_v48  ;;  %v1185_v51 = vpop.f32.mrb[7].mxu0 }
 0x596   : > { %v978_v52 = vmax.f32 %v976_v49, 0.0  ;;  %v977_v53 = vadd.f32 %v973_v50, %v697_v33 }
 0x598   : > { %980 = vst.msk [vmem:[%s379_s29] sm:$0xff] %vm530_vm7, %v978_v52  ;;  %v979_v54 = vmax.f32 %v977_v53, 0.0 }
 0x59a   : > { %981 = vst.msk [vmem:[%s379_s29 + $0x8] sm:$0xff] %vm530_vm7, %v979_v54 }
 0x59b   : > { %1312 = shalt.err (!%p1309_p3)
}
 0x59c   : > { %s1313_s15 = scalar_lea.hbm %s1670_s16, 256  ;;  %s1317_s13 = scalar_lea.hbm %s1729_s11, 512 }
 0x59d   : > { %p1314_p4 = scmp.ne.s32.totalorder %s1670_s16, %s1313_s15  ;;  %p1318_p9 = scmp.lt.u32.totalorder %s1670_s16, %s1729_s11 }
 0x59e   : > { %p1319_p10 = scmp.lt.u32.totalorder %s1317_s13, %s1313_s15  ;;  %p1321_p12 = scmp.lt.u32.totalorder %s1313_s15, %s1670_s16 }
 0x59f   : > { %p1315_p7 = pnand %p1314_p4, %p1469_p5 }
 0x5a0   : > { %p1320_p11 = por %p1319_p10, %p1318_p9 }
 0x5a1   : > { %p1316_p8 = pneg %p1315_p7 }
 0x5a2   : > { %p1322_p13 = por %p1321_p12, %p1320_p11 }
 0x5a4   : > { %p1323_p0 = pnand %p1322_p13, %p1316_p8 }
 0x5a6   : > { %1326 = shalt.err (!%p1323_p0)
}
 0x5a7   : > { %s1370_s14 = smov 128   ;;  %s1733_s25 = smov 8  }
 0x5a8   : > { %1194 = dma.vmem_to_hbm [thread:$0]  (%p1469_p5), %s1673_s30, 256, %s1670_s16, %s1676_s21, %s1370_s14, %s1370_s14, %s1733_s25  }
 0x5a9 PF: > { %p1200_p1 = scmp.ge.s32.totalorder %s1361_s20, 2  ;;  %s1011_s29 = sand.u32 1, %s1349_s17  }
 0x5aa   : > { %s1012_s15 = scalar_lea.sflag [#allocation3], %s1011_s29 }
 0x5ab   : > { %p1197_p2 = pnand %p1200_p1, %p1473_p6 }
 0x5ad   : > { %1344 = dma.done.wait (!%p1197_p2), %s1012_s15, 256  }
 0x5ae   : > { %1346 = vsyncadd (!%p1197_p2), %s1012_s15, 4294967040  ;;  %p21_p3 = scmp.ge.s32.totalorder %s1456_s23, 4   ;;  %s1734_s17 = smov %s1353_s18 }
 0x5af   : > { %s1735_s18 = smov %s1357_s19  ;;  %s1736_s19 = smov %s1467_s26 }
 0x5b0   : > { %s1737_s20 = smov %s1456_s23  ;;  %23 = sbr.rel (!%p21_p3) target bundleno = 3 (0x3), region = 99 }
 0x5b7   :  { %1017 = vsyncpa [#allocation3], 1 }
 0x5b8   :  { %1019 = vsyncpa [#allocation3 + $0x1], 1 }

</bundles_post_ra>
